<compile_context>
chip_gen: v7x
topology: tpu7x:2x2x1
jax: 0.10.0
libtpu: 0.0.40
codegen_flags: <defaults>
</compile_context>

<pallas_src>
import math

import jax
import jax.numpy as jnp
from jax.experimental import pallas as pl
from jax.experimental.pallas import tpu as pltpu


def _round_up(x, m):
    return pl.cdiv(x, m) * m


# ---------------------------------------------------------------------------
# Kernels
# ---------------------------------------------------------------------------

def _lora_kernel_cached(x_ref, wt_ref, bias_ref, at_ref, bt_ref, o_ref,
                        acc_ref, xa_acc_ref, xa_ref):
    """grid = (M tiles ['parallel'], N tiles ['arbitrary'], K tiles ['arbitrary']).

    INVARIANT: the xa cache written at j == 0 is only valid because the N axis
    is the sequentially iterated ('arbitrary') axis and scratch is per-core.
    If the N axis is ever marked parallel, use _lora_kernel_nocache instead.
    """
    j = pl.program_id(1)
    k = pl.program_id(2)
    nk = pl.num_programs(2)

    @pl.when(k == 0)
    def _():
        acc_ref[...] = jnp.zeros_like(acc_ref)

    @pl.when(jnp.logical_and(j == 0, k == 0))
    def _():
        xa_acc_ref[...] = jnp.zeros_like(xa_acc_ref)

    # Base dense path: x @ W.T (W.T pre-materialized -> no in-kernel transpose).
    acc_ref[...] += jnp.dot(x_ref[...], wt_ref[...],
                            preferred_element_type=jnp.float32)

    # LoRA down-projection x @ A.T: N-tile invariant -> compute once per M tile.
    @pl.when(j == 0)
    def _():
        xa_acc_ref[...] += jnp.dot(x_ref[...], at_ref[...],
                                   preferred_element_type=jnp.float32)

    # Cast the cached xa to compute dtype ONCE per M tile (not per N tile).
    @pl.when(jnp.logical_and(j == 0, k == nk - 1))
    def _():
        xa_ref[...] = xa_acc_ref[...].astype(xa_ref.dtype)

    @pl.when(k == nk - 1)
    def _():
        lora = jnp.dot(xa_ref[...], bt_ref[...],
                       preferred_element_type=jnp.float32)
        o_ref[...] = (acc_ref[...] + lora
                      + bias_ref[...].astype(jnp.float32)).astype(o_ref.dtype)


def _lora_kernel_nocache(x_ref, wt_ref, bias_ref, at_ref, bt_ref, o_ref,
                         acc_ref, xa_acc_ref):
    """Single-M-tile (decode) variant: recompute x @ A.T per N tile (only
    2*tm*K*r flops, negligible for r <= 64) so both M and N axes can be
    'parallel' and a v7x megacore can split the N axis across its two cores."""
    k = pl.program_id(2)
    nk = pl.num_programs(2)

    @pl.when(k == 0)
    def _():
        acc_ref[...] = jnp.zeros_like(acc_ref)
        xa_acc_ref[...] = jnp.zeros_like(xa_acc_ref)

    acc_ref[...] += jnp.dot(x_ref[...], wt_ref[...],
                            preferred_element_type=jnp.float32)
    xa_acc_ref[...] += jnp.dot(x_ref[...], at_ref[...],
                               preferred_element_type=jnp.float32)

    @pl.when(k == nk - 1)
    def _():
        lora = jnp.dot(xa_acc_ref[...].astype(bt_ref.dtype), bt_ref[...],
                       preferred_element_type=jnp.float32)
        o_ref[...] = (acc_ref[...] + lora
                      + bias_ref[...].astype(jnp.float32)).astype(o_ref.dtype)


def _dense_kernel(x_ref, wt_ref, bias_ref, o_ref, acc_ref):
    """Merged-adapter / r == 0 fast path: plain streamed matmul + bias."""
    k = pl.program_id(2)
    nk = pl.num_programs(2)

    @pl.when(k == 0)
    def _():
        acc_ref[...] = jnp.zeros_like(acc_ref)

    acc_ref[...] += jnp.dot(x_ref[...], wt_ref[...],
                            preferred_element_type=jnp.float32)

    @pl.when(k == nk - 1)
    def _():
        o_ref[...] = (acc_ref[...]
                      + bias_ref[...].astype(jnp.float32)).astype(o_ref.dtype)


# ---------------------------------------------------------------------------
# One-time parameter preparation (hoisted out of the per-call hot path)
# ---------------------------------------------------------------------------

def prepare_lora_params(w, lora_a=None, lora_b=None, bias=None, *,
                        scaling=1.0,
                        compute_dtype=jnp.bfloat16,
                        fan_in_fan_out=False,
                        merge_adapter=False,
                        k_tile_threshold=4096,
                        max_tk=2048,
                        max_tn=512):
    """Transpose / scale / pad / cast the weights ONCE.

    w:       (out_features, in_features), or (in_features, out_features) if
             fan_in_fan_out=True (matches the module's transposed storage).
    lora_a:  (r, in_features) or None
    lora_b:  (out_features, r) or None
    bias:    (out_features,) or None
    scaling: lora_alpha / r
    """
    w_t = w if fan_in_fan_out else w.T                      # (in, out)
    in_features, out_features = w_t.shape

    has_lora = (lora_a is not None and lora_b is not None
                and lora_a.shape[0] > 0)
    r = int(lora_a.shape[0]) if has_lora else 0

    if has_lora and merge_adapter:
        # W' = W + scaling * B @ A (algebraically identical for dropout = 0);
        # removes the LoRA branch, A/B DMA and xa scratch from the kernel.
        w_t = (w_t.astype(jnp.float32)
               + scaling * (lora_a.T.astype(jnp.float32)
                            @ lora_b.T.astype(jnp.float32)))
        has_lora = False
        r = 0

    # ---- tile geometry: lane-dense N, optional K tiling for big in_features.
    n_pad = _round_up(out_features, 128)
    max_tn = max(int(max_tn) // 128 * 128, 128)
    tn = next(c for c in (512, 384, 256, 128) if c <= max_tn and n_pad % c == 0)

    if in_features <= k_tile_threshold:
        tk, k_pad = in_features, in_features           # full K, single K step
    else:
        tk = max(int(max_tk) // 128 * 128, 128)        # K-tiled for VMEM fit
        k_pad = _round_up(in_features, tk)

    # ---- layout + pad + cast (one time, NOT per forward call).
    w_t = w_t.astype(compute_dtype)
    if (k_pad, n_pad) != (in_features, out_features):
        w_t = jnp.pad(w_t, ((0, k_pad - in_features), (0, n_pad - out_features)))

    if bias is None:
        bias2d = jnp.zeros((1, n_pad), jnp.float32)
    else:
        bias2d = bias.reshape(1, out_features).astype(jnp.float32)
        if n_pad != out_features:
            bias2d = jnp.pad(bias2d, ((0, 0), (0, n_pad - out_features)))

    a_t = b_t = None
    if has_lora:
        a_t = lora_a.T.astype(compute_dtype)                               # (in, r)
        b_t = (lora_b.astype(jnp.float32) * scaling).T.astype(compute_dtype)  # (r, out)
        if k_pad != in_features:
            a_t = jnp.pad(a_t, ((0, k_pad - in_features), (0, 0)))
        if n_pad != out_features:
            b_t = jnp.pad(b_t, ((0, 0), (0, n_pad - out_features)))

    return dict(w_t=w_t, bias=bias2d, a_t=a_t, b_t=b_t,
                in_features=in_features, out_features=out_features,
                k_pad=k_pad, n_pad=n_pad, tk=tk, tn=tn, r=r,
                has_lora=has_lora, compute_dtype=compute_dtype)


def _choose_tm(M, compute_dtype):
    # Large M tiles amortize W streaming (flops/byte on W ~ 2*tm/bytes); for
    # small M (decode) only round up to the 8-row sublane granule.
    cap = 512 if jnp.dtype(compute_dtype).itemsize <= 2 else 256
    if M <= cap:
        return max(8, _round_up(M, 8))
    cands = [c for c in (512, 384, 256, 128) if c <= cap]
    return min(cands, key=lambda c: (_round_up(M, c), -c))


def _vmem_limit_bytes(tm, tn, tk, r, compute_dtype):
    cb = jnp.dtype(compute_dtype).itemsize
    dbuf = 2 * (tm * tk + tk * tn + tm * tn + tk * r + r * tn) * cb  # dbl-buffered tiles
    dbuf += 2 * tn * 4                                               # bias (f32)
    scratch = tm * tn * 4 + tm * r * 4 + tm * r * cb                 # acc + xa
    total = int((dbuf + scratch) * 1.3) + (2 << 20)
    # Floor well above tiny configs; cap at 64 MiB so it also fits v7x VMEM.
    return max(32 << 20, min(total, 64 << 20))


# ---------------------------------------------------------------------------
# Forward
# ---------------------------------------------------------------------------

def lora_linear(x, params, *, tm=None):
    """y = x @ W.T + bias + scaling * (x @ A.T @ B.T), with prepared params."""
    in_features = params["in_features"]
    out_features = params["out_features"]
    k_pad, n_pad = params["k_pad"], params["n_pad"]
    tk, tn, r = params["tk"], params["tn"], params["r"]
    compute_dtype = params["compute_dtype"]
    out_dtype = x.dtype

    orig_shape = x.shape
    assert orig_shape[-1] == in_features
    x2d = x.reshape(-1, in_features).astype(compute_dtype)
    M = x2d.shape[0]

    if tm is None:
        tm = _choose_tm(M, compute_dtype)
    m_pad = _round_up(M, tm)
    if m_pad != M or k_pad != in_features:
        x2d = jnp.pad(x2d, ((0, m_pad - M), (0, k_pad - in_features)))

    grid = (m_pad // tm, n_pad // tn, k_pad // tk)

    x_spec = pl.BlockSpec((tm, tk), lambda i, j, k: (i, k))
    w_spec = pl.BlockSpec((tk, tn), lambda i, j, k: (k, j))
    b_spec = pl.BlockSpec((1, tn), lambda i, j, k: (0, j))
    out_spec = pl.BlockSpec((tm, tn), lambda i, j, k: (i, j))
    out_shape = jax.ShapeDtypeStruct((m_pad, n_pad), out_dtype)
    vmem_limit = _vmem_limit_bytes(tm, tn, tk, r, compute_dtype)
    acc = pltpu.VMEM((tm, tn), jnp.float32)

    if not params["has_lora"]:
        out2d = pl.pallas_call(
            _dense_kernel,
            out_shape=out_shape,
            grid=grid,
            in_specs=[x_spec, w_spec, b_spec],
            out_specs=out_spec,
            scratch_shapes=[acc],
            compiler_params=pltpu.CompilerParams(
                dimension_semantics=("parallel", "parallel", "arbitrary"),
                vmem_limit_bytes=vmem_limit),
        )(x2d, params["w_t"], params["bias"])
    else:
        a_spec = pl.BlockSpec((tk, r), lambda i, j, k: (k, 0))
        bt_spec = pl.BlockSpec((r, tn), lambda i, j, k: (0, j))
        xa_acc = pltpu.VMEM((tm, r), jnp.float32)
        if grid[0] > 1:
            # Cache x @ A.T across the sequential ('arbitrary') N axis.
            out2d = pl.pallas_call(
                _lora_kernel_cached,
                out_shape=out_shape,
                grid=grid,
                in_specs=[x_spec, w_spec, b_spec, a_spec, bt_spec],
                out_specs=out_spec,
                scratch_shapes=[acc, xa_acc, pltpu.VMEM((tm, r), compute_dtype)],
                compiler_params=pltpu.CompilerParams(
                    # N must stay 'arbitrary': the xa cache written at j == 0
                    # is reused by later (sequential) N steps on the same core.
                    dimension_semantics=("parallel", "arbitrary", "arbitrary"),
                    vmem_limit_bytes=vmem_limit),
            )(x2d, params["w_t"], params["bias"], params["a_t"], params["b_t"])
        else:
            # Single M tile (decode): recompute x @ A.T per step so both M and
            # N axes can be 'parallel' (second v7x TensorCore gets N tiles).
            out2d = pl.pallas_call(
                _lora_kernel_nocache,
                out_shape=out_shape,
                grid=grid,
                in_specs=[x_spec, w_spec, b_spec, a_spec, bt_spec],
                out_specs=out_spec,
                scratch_shapes=[acc, xa_acc],
                compiler_params=pltpu.CompilerParams(
                    dimension_semantics=("parallel", "parallel", "arbitrary"),
                    vmem_limit_bytes=vmem_limit),
            )(x2d, params["w_t"], params["bias"], params["a_t"], params["b_t"])

    out2d = out2d[:M, :out_features]
    return out2d.reshape(*orig_shape[:-1], out_features)


if __name__ == "__main__":
    key = jax.random.PRNGKey(0)
    kx, kw, kb, ka, kbb, k2x, k2w, k2a, k2b = jax.random.split(key, 9)

    # ---------------- primary test: module-sized small shapes ----------------
    batch, seq = 2, 8
    in_features, out_features = 32, 32
    r, lora_alpha = 4, 8
    scaling = lora_alpha / r

    x = jax.random.normal(kx, (batch, seq, in_features), dtype=jnp.float32)
    w = jax.random.normal(kw, (out_features, in_features), jnp.float32) / math.sqrt(in_features)
    bias = jax.random.normal(kb, (out_features,), jnp.float32) * 0.1
    bound = 1.0 / math.sqrt(in_features)   # kaiming_uniform_(a=sqrt(5))
    lora_a = jax.random.uniform(ka, (r, in_features), jnp.float32,
                                minval=-bound, maxval=bound)
    # PyTorch inits lora_B to zeros; use nonzero values so the LoRA path is
    # actually exercised (forward semantics unchanged).
    lora_b = jax.random.normal(kbb, (out_features, r), jnp.float32) * 0.05

    with jax.default_matmul_precision("highest"):
        x2d = x.reshape(-1, in_features)
        ref = (x2d @ w.T + bias[None, :]
               + (x2d @ lora_a.T @ lora_b.T) * scaling).reshape(batch, seq, out_features)

    # f32 compute path (exact check).
    p_f32 = prepare_lora_params(w, lora_a, lora_b, bias, scaling=scaling,
                                compute_dtype=jnp.float32)
    y = lora_linear(x, p_f32)
    jax.block_until_ready(y)
    assert y.shape == (batch, seq, out_features)
    assert jnp.allclose(y, ref, atol=1e-5, rtol=1e-5), "f32 mismatch vs reference"

    # Default bf16 compute path (f32 accumulation): loose tolerance.
    p_bf16 = prepare_lora_params(w, lora_a, lora_b, bias, scaling=scaling)
    y_bf16 = lora_linear(x, p_bf16)
    jax.block_until_ready(y_bf16)
    assert jnp.allclose(y_bf16, ref, atol=1e-1, rtol=1e-1), "bf16 mismatch vs reference"

    # Merged-adapter fast path (W' = W + scaling*B@A folded at prep time).
    p_merged = prepare_lora_params(w, lora_a, lora_b, bias, scaling=scaling,
                                   compute_dtype=jnp.float32, merge_adapter=True)
    y_m = lora_linear(x, p_merged)
    jax.block_until_ready(y_m)
    assert jnp.allclose(y_m, ref, atol=1e-4, rtol=1e-4), "merged-path mismatch"

    # -------- secondary test: K-tiling + cached-xa kernel + bias=None --------
    b2, s2, in2, out2, r2 = 2, 64, 256, 256, 8
    sc2 = 16 / r2
    x2 = jax.random.normal(k2x, (b2, s2, in2), jnp.float32)
    w2 = jax.random.normal(k2w, (out2, in2), jnp.float32) / math.sqrt(in2)
    a2 = jax.random.normal(k2a, (r2, in2), jnp.float32) * 0.1
    bb2 = jax.random.normal(k2b, (out2, r2), jnp.float32) * 0.05

    with jax.default_matmul_precision("highest"):
        x2f = x2.reshape(-1, in2)
        ref2 = (x2f @ w2.T + (x2f @ a2.T @ bb2.T) * sc2).reshape(b2, s2, out2)

    # Force small tiles so the 3-D (M,N,K) grid and the cached-xa kernel run
    # even at these small test shapes (production shapes get big tiles).
    p2 = prepare_lora_params(w2, a2, bb2, None, scaling=sc2,
                             compute_dtype=jnp.float32,
                             k_tile_threshold=128, max_tk=128, max_tn=128)
    y2 = lora_linear(x2, p2, tm=64)   # grid = (2, 2, 2)
    jax.block_until_ready(y2)
    assert jnp.allclose(y2, ref2, atol=1e-4, rtol=1e-4), "K-tiled path mismatch"

    print("KERNEL_OK")
</pallas_src>

<mosaic_0001>
module attributes {stable_mosaic.version = 11 : i64} {
  func.func @_lora_kernel_nocache(%arg0: i32, %arg1: i32, %arg2: i32, %arg3: memref<16x32xf32, #tpu.memory_space<vmem>>, %arg4: memref<32x128xf32, #tpu.memory_space<vmem>>, %arg5: memref<1x128xf32, #tpu.memory_space<vmem>>, %arg6: memref<32x4xf32, #tpu.memory_space<vmem>>, %arg7: memref<4x128xf32, #tpu.memory_space<vmem>>, %arg8: memref<16x128xf32, #tpu.memory_space<vmem>>, %arg9: memref<16x128xf32, #tpu.memory_space<vmem>>, %arg10: memref<16x4xf32, #tpu.memory_space<vmem>>) attributes {dimension_semantics = [#tpu.dimension_semantics<parallel>, #tpu.dimension_semantics<parallel>, #tpu.dimension_semantics<arbitrary>], iteration_bounds = array<i64: 1, 1, 1>, scalar_prefetch = 0 : i64, scratch_operands = 2 : i64, tpu.core_type = #tpu.core_type<tc>, window_params = [{transform_indices = @transform_0, window_bounds = array<i64: 16, 32>}, {transform_indices = @transform_1, window_bounds = array<i64: 32, 128>}, {transform_indices = @transform_2, window_bounds = array<i64: 1, 128>}, {transform_indices = @transform_3, window_bounds = array<i64: 32, 4>}, {transform_indices = @transform_4, window_bounds = array<i64: 4, 128>}, {transform_indices = @transform_5, window_bounds = array<i64: 16, 128>}]} {
    %c0_i32 = arith.constant 0 : i32
    %0 = arith.cmpi eq, %arg2, %c0_i32 : i32
    %1 = arith.extui %0 : i1 to i32
    %c0_i32_0 = arith.constant 0 : i32
    %2 = arith.cmpi ne, %1, %c0_i32_0 : i32
    scf.if %2 {
      %cst_19 = arith.constant 0.000000e+00 : f32
      %18 = vector.broadcast %cst_19 : f32 to vector<16x128xf32>
      %c0_20 = arith.constant 0 : index
      %c0_21 = arith.constant 0 : index
      %19 = vector.load %arg9[%c0_20, %c0_21] : memref<16x128xf32, #tpu.memory_space<vmem>>, vector<16x128xf32>
      tpu.vector_store %arg9[%c0_20, %c0_21], %18 {strides = array<i32>} : memref<16x128xf32, #tpu.memory_space<vmem>>, vector<16x128xf32>,
      %cst_22 = arith.constant 0.000000e+00 : f32
      %20 = vector.broadcast %cst_22 : f32 to vector<16x4xf32>
      %c0_23 = arith.constant 0 : index
      %c0_24 = arith.constant 0 : index
      %21 = vector.load %arg10[%c0_23, %c0_24] : memref<16x4xf32, #tpu.memory_space<vmem>>, vector<16x4xf32>
      tpu.vector_store %arg10[%c0_23, %c0_24], %20 {strides = array<i32>} : memref<16x4xf32, #tpu.memory_space<vmem>>, vector<16x4xf32>,
    } else {
    }
    %c0 = arith.constant 0 : index
    %c0_1 = arith.constant 0 : index
    %3 = vector.load %arg9[%c0, %c0_1] : memref<16x128xf32, #tpu.memory_space<vmem>>, vector<16x128xf32>
    %c0_2 = arith.constant 0 : index
    %c0_3 = arith.constant 0 : index
    %4 = vector.load %arg3[%c0_2, %c0_3] : memref<16x32xf32, #tpu.memory_space<vmem>>, vector<16x32xf32>
    %c0_4 = arith.constant 0 : index
    %c0_5 = arith.constant 0 : index
    %5 = vector.load %arg4[%c0_4, %c0_5] : memref<32x128xf32, #tpu.memory_space<vmem>>, vector<32x128xf32>
    %cst = arith.constant dense<0.000000e+00> : vector<16x128xf32>
    %6 = tpu.matmul %4, %5, %cst {dimension_numbers = #tpu.dot_dimension_numbers<[1], [0], [0], [1], [0, 0, 1, 1], [], []>} : vector<16x32xf32>, vector<32x128xf32>, vector<16x128xf32> -> vector<16x128xf32>
    %7 = arith.addf %3, %6 : vector<16x128xf32>
    %c0_6 = arith.constant 0 : index
    %c0_7 = arith.constant 0 : index
    %8 = vector.load %arg9[%c0_6, %c0_7] : memref<16x128xf32, #tpu.memory_space<vmem>>, vector<16x128xf32>
    tpu.vector_store %arg9[%c0_6, %c0_7], %7 {strides = array<i32>} : memref<16x128xf32, #tpu.memory_space<vmem>>, vector<16x128xf32>,
    %c0_8 = arith.constant 0 : index
    %c0_9 = arith.constant 0 : index
    %9 = vector.load %arg10[%c0_8, %c0_9] : memref<16x4xf32, #tpu.memory_space<vmem>>, vector<16x4xf32>
    %c0_10 = arith.constant 0 : index
    %c0_11 = arith.constant 0 : index
    %10 = vector.load %arg3[%c0_10, %c0_11] : memref<16x32xf32, #tpu.memory_space<vmem>>, vector<16x32xf32>
    %c0_12 = arith.constant 0 : index
    %c0_13 = arith.constant 0 : index
    %11 = vector.load %arg6[%c0_12, %c0_13] : memref<32x4xf32, #tpu.memory_space<vmem>>, vector<32x4xf32>
    %cst_14 = arith.constant dense<0.000000e+00> : vector<16x4xf32>
    %12 = tpu.matmul %10, %11, %cst_14 {dimension_numbers = #tpu.dot_dimension_numbers<[1], [0], [0], [1], [0, 0, 1, 1], [], []>} : vector<16x32xf32>, vector<32x4xf32>, vector<16x4xf32> -> vector<16x4xf32>
    %13 = arith.addf %9, %12 : vector<16x4xf32>
    %c0_15 = arith.constant 0 : index
    %c0_16 = arith.constant 0 : index
    %14 = vector.load %arg10[%c0_15, %c0_16] : memref<16x4xf32, #tpu.memory_space<vmem>>, vector<16x4xf32>
    tpu.vector_store %arg10[%c0_15, %c0_16], %13 {strides = array<i32>} : memref<16x4xf32, #tpu.memory_space<vmem>>, vector<16x4xf32>,
    %c0_i32_17 = arith.constant 0 : i32
    %15 = arith.cmpi eq, %arg2, %c0_i32_17 : i32
    %16 = arith.extui %15 : i1 to i32
    %c0_i32_18 = arith.constant 0 : i32
    %17 = arith.cmpi ne, %16, %c0_i32_18 : i32
    scf.if %17 {
      %c0_19 = arith.constant 0 : index
      %c0_20 = arith.constant 0 : index
      %18 = vector.load %arg10[%c0_19, %c0_20] : memref<16x4xf32, #tpu.memory_space<vmem>>, vector<16x4xf32>
      %c0_21 = arith.constant 0 : index
      %c0_22 = arith.constant 0 : index
      %19 = vector.load %arg7[%c0_21, %c0_22] : memref<4x128xf32, #tpu.memory_space<vmem>>, vector<4x128xf32>
      %cst_23 = arith.constant dense<0.000000e+00> : vector<16x128xf32>
      %20 = tpu.matmul %18, %19, %cst_23 {dimension_numbers = #tpu.dot_dimension_numbers<[1], [0], [0], [1], [0, 0, 1, 1], [], []>} : vector<16x4xf32>, vector<4x128xf32>, vector<16x128xf32> -> vector<16x128xf32>
      %c0_24 = arith.constant 0 : index
      %c0_25 = arith.constant 0 : index
      %21 = vector.load %arg9[%c0_24, %c0_25] : memref<16x128xf32, #tpu.memory_space<vmem>>, vector<16x128xf32>
      %22 = arith.addf %21, %20 : vector<16x128xf32>
      %c0_26 = arith.constant 0 : index
      %c0_27 = arith.constant 0 : index
      %23 = vector.load %arg5[%c0_26, %c0_27] : memref<1x128xf32, #tpu.memory_space<vmem>>, vector<1x128xf32>
      %24 = vector.broadcast %23 : vector<1x128xf32> to vector<16x128xf32>
      %25 = arith.addf %22, %24 : vector<16x128xf32>
      %c0_28 = arith.constant 0 : index
      %c0_29 = arith.constant 0 : index
      %26 = vector.load %arg8[%c0_28, %c0_29] : memref<16x128xf32, #tpu.memory_space<vmem>>, vector<16x128xf32>
      tpu.vector_store %arg8[%c0_28, %c0_29], %25 {strides = array<i32>} : memref<16x128xf32, #tpu.memory_space<vmem>>, vector<16x128xf32>,
    } else {
    }
    return
  }
  func.func @transform_0(%arg0: i32, %arg1: i32, %arg2: i32) -> (i32, i32) {
    %c0_i32 = arith.constant 0 : i32
    return %arg0, %arg2 : i32, i32
  }
  func.func @transform_1(%arg0: i32, %arg1: i32, %arg2: i32) -> (i32, i32) {
    %c0_i32 = arith.constant 0 : i32
    return %arg2, %arg1 : i32, i32
  }
  func.func @transform_2(%arg0: i32, %arg1: i32, %arg2: i32) -> (i32, i32) {
    %c0_i32 = arith.constant 0 : i32
    %c0_i32_0 = arith.constant 0 : i32
    return %c0_i32, %arg1 : i32, i32
  }
  func.func @transform_3(%arg0: i32, %arg1: i32, %arg2: i32) -> (i32, i32) {
    %c0_i32 = arith.constant 0 : i32
    %c0_i32_0 = arith.constant 0 : i32
    return %arg2, %c0_i32 : i32, i32
  }
  func.func @transform_4(%arg0: i32, %arg1: i32, %arg2: i32) -> (i32, i32) {
    %c0_i32 = arith.constant 0 : i32
    %c0_i32_0 = arith.constant 0 : i32
    return %c0_i32, %arg1 : i32, i32
  }
  func.func @transform_5(%arg0: i32, %arg1: i32, %arg2: i32) -> (i32, i32) {
    %c0_i32 = arith.constant 0 : i32
    return %arg0, %arg1 : i32, i32
  }
}

</mosaic_0001>

<bundles_post_ra>
// kernel: tpu_custom_call.1
= control target key start
LH: loop header
LB: loop body
LE: loop exit
PB: predicated region body
PF: predicated region fallthrough
CT: control target
= control target key end

     0   :  { %10 = vsyncpa [#allocation5], 0  ;;  %s581_s0 = inlined_call_operand.hbm [shape: f32[16,32], index: 0, kind: input, shape index: {}]   ;;  %s582_s1 = inlined_call_operand.vmem [shape: f32[32,128], index: 1, kind: input, shape index: {}]   ;;  %s583_s2 = inlined_call_operand.vmem [shape: f32[1,128], index: 2, kind: input, shape index: {}]   ;;  %s584_s3 = inlined_call_operand.vmem [shape: f32[32,4], index: 3, kind: input, shape index: {}]   ;;  %s585_s4 = inlined_call_operand.vmem [shape: f32[4,128], index: 4, kind: input, shape index: {}]   ;;  %s586_s5 = inlined_call_operand.hbm [shape: f32[16,128], index: 5, kind: output, shape index: {}]  }
   0x1   :  { %11 = vsyncpa [#allocation6], 0  ;;  %s476_s18 = smov [#allocation4]   ;;  %s428_s22 = scalar_lea.hbm %s581_s0, 256 }
   0x2   :  { %s17_s19 = sshll.u32 %s476_s18, 4  ;;  %p429_p0 = scmp.ne.s32.totalorder %s581_s0, %s428_s22  ;;  %s18_s19 = int_to_ptr.vmem [resolvable:$true] %s17_s19 }
   0x3   :  { %p432_p1 = scmp.lt.u32.totalorder %s428_s22, %s581_s0 }
   0x5   :  { %p434_p2 = pnand %p432_p1, %p429_p0 }
   0x7   :  { %437 = shalt.err (!%p434_p2)
}
   0x8   :  { %s438_s27 = scalar_lea.vmem %s18_s19, 256  ;;  %p443_p4 = scmp.lt.s32.totalorder %s18_s19, %s18_s19 }
   0x9   :  { %p439_p3 = scmp.ne.s32.totalorder %s18_s19, %s438_s27  ;;  %p444_p5 = scmp.lt.s32.totalorder %s438_s27, %s438_s27 }
   0xb   :  { %p445_p6 = por %p444_p5, %p443_p4 }
   0xd   :  { %p446_p7 = pnand %p445_p6, %p439_p3 }
   0xf   :  { %449 = shalt.err (!%p446_p7)
}
  0x10   :  { %s477_s28 = smov 128   ;;  %s478_s29 = smov 8  }
  0x11   :  { %23 = dma.hbm_to_vmem [thread:$0]  %s581_s0, 256, %s18_s19, [#allocation5], %s477_s28, %s477_s28, %s478_s29  }
  0x12   :  { %472 = dma.done.wait [#allocation5], 256  }
  0x13   :  { %473 = vsyncadd [#allocation5], 4294967040  ;;  %vm41_vm0 = vcmask 31744   ;;  %v479_v0 = vmov 0.0   ;;  %vm52_vm1 = vcmask 261120   ;;  %v142_v1 = vld [vmem:[%s584_s3] sm:$0xff] }
  0x14   :  { %43 = vst.msk [vmem:[#allocation3 + $0x8] sm:$0xff] %vm41_vm0, %v479_v0  ;;  %42 = vst.msk [vmem:[#allocation3] sm:$0xff] %vm41_vm0, %v479_v0  ;;  %v143_v2 = vld [vmem:[%s584_s3 + $0x8] sm:$0xff]  ;;  %v144_v3 = vld [vmem:[%s584_s3 + $0x10] sm:$0xff]  ;;  %vm244_vm2 = vcmask 1043456   ;;  %s480_s23 = smov [#allocation7]  }
  0x15   :  { %v413_v4 = vpack.c.bf16 %v143_v2, %v142_v1  ;;  %v145_v5 = vld [vmem:[%s584_s3 + $0x18] sm:$0xff]  ;;  %v140_v6 = vld [vmem:[#allocation4] sm:$0xff]  ;;  %v48_v8 = vld [vmem:[%s582_s1] sm:$0xff]  ;;  %s343_s24 = sshll.u32 %s480_s23, 4  ;;  %s344_s24 = int_to_ptr.vmem [resolvable:$true] %s343_s24 }
  0x16   :  { %v417_v7 = vpack.c.bf16 %v145_v5, %v144_v3  ;;  %397 = vmatprep.mubr.msk.f32.mxu1 %vm52_vm1, %v140_v6  ;;  %v49_v9 = vld [vmem:[%s582_s1 + $0x8] sm:$0xff]  ;;  %v50_v10 = vld [vmem:[%s582_s1 + $0x10] sm:$0xff]  ;;  %386 = vmatprep.mubr.msk.f32.mxu0 %vm52_vm1, %v140_v6  ;;  %v51_v12 = vld [vmem:[%s582_s1 + $0x18] sm:$0xff]  ;;  %s450_s25 = scalar_lea.vmem %s344_s24, 256  ;;  %p455_p9 = scmp.lt.s32.totalorder %s344_s24, %s344_s24 }
  0x17   :  { %414 = vmatprep.subr.bf16.mxu1 %v413_v4  ;;  %v405_v11 = vpack.c.bf16 %v49_v9, %v48_v8  ;;  %v409_v13 = vpack.c.bf16 %v51_v12, %v50_v10  ;;  %v141_v14 = vld [vmem:[#allocation4 + $0x8] sm:$0xff]  ;;  %v237_v15 = vld [vmem:[%s585_s4] sm:$0xf]  ;;  %p451_p8 = scmp.ne.s32.totalorder %s344_s24, %s450_s25  ;;  %p456_p10 = scmp.lt.s32.totalorder %s450_s25, %s450_s25 }
  0x18   :  { %416 = vmatpush3.bf16.msra.mxu1 %v413_v4  ;;  %v362_v24 = vld [vmem:[%s583_s2] ss:$0 sm:$0xff] }
  0x19   :  { %418 = vmatprep.subr.bf16.mxu1 %v417_v7  ;;  %406 = vmatprep.subr.bf16.mxu0 %v405_v11  ;;  %p457_p11 = por %p456_p10, %p455_p9 }
  0x1a   :  { %408 = vmatpush3.bf16.msra.mxu0 %v405_v11 }
  0x1b   :  { %410 = vmatprep.subr.bf16.mxu0 %v409_v13  ;;  %v139_v16 = vld [vmem:[#allocation3 + $0x8] sm:$0xff]  ;;  %v138_v17 = vld [vmem:[#allocation3] sm:$0xff]  ;;  %p458_p12 = pnand %p457_p11, %p451_p8 }
  0x1c   :  { %420 = vmatpush3.bf16.msra.mxu1 %v417_v7 }
  0x1e   :  { %412 = vmatpush3.bf16.msra.mxu0 %v409_v13 }
  0x1f   :  { %398 = vmatmul.mubr.msk.f32.vlgmr.msra.gmra.mrb[0].mxu1 %vm52_vm1, %v141_v14  ;;  %400 = vmatprep.subr.msk.mxu0 %vm244_vm2, %v237_v15 }
  0x21   :  { %387 = vmatmul.mubr.msk.f32.vlgmr.msra.gmra.mrb[0].mxu0 %vm52_vm1, %v141_v14 }
  0x22   :  { %401 = vmatpush3.msk.msra.mxu0 %vm244_vm2, %v237_v15 }
  0xf2   :  { %v399_v18 = vpop.f32.mrb[0].mxu1 }
  0xf3   :  { %v228_v19 = vadd.f32 %v399_v18, %v139_v16  ;;  %v218_v20 = vpop.f32.mrb[1].mxu1 }
  0xf4   :  { %v227_v21 = vadd.f32 %v218_v20, %v138_v17 }
  0xf5   :  { %231 = vst.msk [vmem:[#allocation3 + $0x8] sm:$0xff] %vm41_vm0, %v228_v19 }
  0xf6   :  { %230 = vst.msk [vmem:[#allocation3] sm:$0xff] %vm41_vm0, %v227_v21 }
  0xfc   :  { %v236_v23 = vld [vmem:[#allocation3 + $0x8] sm:$0xff] }
  0xfd   :  { %v235_v22 = vld [vmem:[#allocation3] sm:$0xff] }
  0xfe   :  { %402 = vmatprep.mubr.msk.f32.mxu0 %vm41_vm0, %v235_v22 }
  0xff   :  { %403 = vmatmul.mubr.msk.f32.vlgmr.msra.gmra.mrb[0].mxu0 %vm41_vm0, %v236_v23 }
 0x1d2   :  { %v404_v25 = vpop.f32.mrb[0].mxu0 }
 0x1d3   :  { %v335_v26 = vadd.f32 %v404_v25, %v362_v24  ;;  %v314_v27 = vpop.f32.mrb[1].mxu0 }
 0x1d4   :  { %v334_v28 = vadd.f32 %v362_v24, %v314_v27 }
 0x1d5   :  { %337 = vst [vmem:[#allocation7 + $0x8] sm:$0xff] %v335_v26 }
 0x1d6   :  { %336 = vst [vmem:[#allocation7] sm:$0xff] %v334_v28 }
 0x1d7   :  { %461 = shalt.err (!%p458_p12)
}
 0x1d8   :  { %s462_s2 = scalar_lea.hbm %s586_s5, 256 }
 0x1d9   :  { %p463_p13 = scmp.ne.s32.totalorder %s586_s5, %s462_s2  ;;  %p466_p0 = scmp.lt.u32.totalorder %s462_s2, %s586_s5 }
 0x1db   :  { %p468_p1 = pnand %p466_p0, %p463_p13 }
 0x1dd   :  { %471 = shalt.err (!%p468_p1)
}
 0x1de   :  { %349 = dma.vmem_to_hbm [thread:$0]  %s344_s24, 256, %s586_s5, [#allocation6], %s477_s28, %s477_s28, %s478_s29  }
 0x1df   :  { %474 = dma.done.wait [#allocation6], 256  }
 0x1e0   :  { %475 = vsyncadd [#allocation6], 4294967040 }
 0x1e1   :  { %353 = vsyncpa [#allocation5], 1 }
 0x1e2   :  { %354 = vsyncpa [#allocation6], 1 }

</bundles_post_ra>
